<compile_context>
chip_gen: v5e
topology: v5e:2x2
jax: 0.10.0
libtpu: 0.0.40
codegen_flags: <defaults>
</compile_context>

<pallas_src>
import numpy as np
import jax
import jax.numpy as jnp
from jax.experimental import pallas as pl
from jax.experimental.pallas import tpu as pltpu


_LANE = 128          # lane width; relation dim is padded up to a multiple of this
_ROWS_PER_STEP = 8   # G: rows gathered per grid step (one (8,128) output tile)


# ----------------------------------------------------------------------------
# Pallas kernel: gather G rows of the HBM-resident table into one output tile.
# ----------------------------------------------------------------------------
def _freq_bias_gather_kernel(idx_ref, w_hbm, out_ref, sem):
    # idx_ref : SMEM int32[B_pad]           scalar-prefetched flat pair indices
    # w_hbm   : HBM  f32[num_pairs, Lpad]   embedding table (memory_space=pl.ANY)
    # out_ref : VMEM f32[G, Lpad]           output tile for this grid step
    # sem     : DMA semaphores, shape (G,)
    base = pl.program_id(0) * _ROWS_PER_STEP

    # Issue all G row-DMAs before waiting on any -> keep them in flight.
    for g in range(_ROWS_PER_STEP):
        row = idx_ref[base + g]
        pltpu.make_async_copy(
            w_hbm.at[pl.ds(row, 1), :],
            out_ref.at[pl.ds(g, 1), :],
            sem.at[g],
        ).start()

    for g in range(_ROWS_PER_STEP):
        row = idx_ref[base + g]
        pltpu.make_async_copy(
            w_hbm.at[pl.ds(row, 1), :],
            out_ref.at[pl.ds(g, 1), :],
            sem.at[g],
        ).wait()


def _gather_rows_pallas(weight_padded, flat_idx, num_rels):
    """weight_padded: f32[num_pairs, Lpad]; flat_idx: int32[B] -> f32[B, num_rels]"""
    B = int(flat_idx.shape[0])
    num_pairs, lane = weight_padded.shape
    G = _ROWS_PER_STEP
    B_pad = ((B + G - 1) // G) * G

    # Clamp indices (Pallas does not bounds-check DMA sources) and pad batch.
    idx = jnp.clip(flat_idx.astype(jnp.int32), 0, num_pairs - 1)
    if B_pad != B:
        idx = jnp.concatenate([idx, jnp.zeros((B_pad - B,), dtype=jnp.int32)])

    out = pl.pallas_call(
        _freq_bias_gather_kernel,
        out_shape=jax.ShapeDtypeStruct((B_pad, lane), weight_padded.dtype),
        grid_spec=pltpu.PrefetchScalarGridSpec(
            num_scalar_prefetch=1,
            grid=(B_pad // G,),
            in_specs=[
                # Table stays in HBM; rows are gathered with manual DMAs.
                pl.BlockSpec(memory_space=pl.ANY),
            ],
            # One lane-dense (G,128) output tile per grid step.
            out_specs=pl.BlockSpec((G, lane), lambda i, idx: (i, 0)),
            scratch_shapes=[pltpu.SemaphoreType.DMA((G,))],
        ),
        compiler_params=pltpu.CompilerParams(
            dimension_semantics=("parallel",),
        ),
    )(idx, weight_padded)

    return out[:B, :num_rels]


# ----------------------------------------------------------------------------
# Module equivalent: builds obj_baseline weight exactly like the PyTorch init.
# ----------------------------------------------------------------------------
class FrequencyBiasGCL:
    def __init__(self, num_obj_cls, fg_matrix_stats, predicate_all_list, eps=1e-3):
        assert predicate_all_list is not None
        assert len(predicate_all_list) in (51, 101)
        self.num_obj_cls = num_obj_cls
        self.num_rel_cls = max(predicate_all_list) + 1

        old_matrix = np.asarray(fg_matrix_stats, dtype=np.float32)
        fg_matrix = np.zeros(
            (num_obj_cls, num_obj_cls, self.num_rel_cls), dtype=np.float32
        )
        lines = 0
        for i in range(len(predicate_all_list)):
            if i == 0 or predicate_all_list[i] > 0:
                fg_matrix[:, :, lines] = old_matrix[:, :, i]
                lines += 1
        assert lines == self.num_rel_cls

        pred_dist = np.log(fg_matrix / fg_matrix.sum(2)[:, :, None] + eps)
        assert pred_dist.shape[0] == pred_dist.shape[1]
        self.num_objs = pred_dist.shape[0]
        self.num_rels = pred_dist.shape[2]

        # Exact nn.Embedding weight (for reference / external use).
        w = pred_dist.reshape(-1, self.num_rels).astype(np.float32)
        self.obj_baseline_weight = jnp.asarray(w)

        # Lane-padded copy used by the kernel (zero-padded to a multiple of 128).
        lane_pad = ((self.num_rels + _LANE - 1) // _LANE) * _LANE
        wp = np.zeros((w.shape[0], lane_pad), dtype=np.float32)
        wp[:, : self.num_rels] = w
        self._weight_padded = jnp.asarray(wp)

    def index_with_labels(self, labels):
        """labels: int32[B, 2] -> f32[B, num_rels]"""
        flat_idx = (labels[:, 0] * self.num_objs + labels[:, 1]).astype(jnp.int32)
        return _gather_rows_pallas(self._weight_padded, flat_idx, self.num_rels)

    def forward(self, labels):
        return self.index_with_labels(labels)

    # TODO(synk): index_with_probability (dense joint-prob @ weight matmul) is
    # not part of forward(); omitted here.


# ----------------------------------------------------------------------------
# Example / self-test
# ----------------------------------------------------------------------------
if __name__ == "__main__":
    key = jax.random.PRNGKey(0)
    k_fg, k_lab = jax.random.split(key)

    NUM_OBJ = 8          # small stand-in for cfg.MODEL.ROI_BOX_HEAD.NUM_CLASSES
    NUM_PRED_LIST = 51   # module asserts 51 or 101
    BATCH = 6

    # Synthetic statistics['fg_matrix'] (strictly positive so log/sum is finite).
    fg_stats = np.asarray(
        jax.random.uniform(
            k_fg, (NUM_OBJ, NUM_OBJ, NUM_PRED_LIST), minval=1.0, maxval=100.0
        )
    )
    # predicate_all_list: keep every column -> num_rel_cls == 51, lines == 51.
    predicate_all_list = [0] + list(range(1, NUM_PRED_LIST))

    model = FrequencyBiasGCL(NUM_OBJ, fg_stats, predicate_all_list, eps=1e-3)

    # labels: [B, 2] object-class index pairs
    labels = jax.random.randint(k_lab, (BATCH, 2), 0, NUM_OBJ, dtype=jnp.int32)

    out = model.forward(labels)
    out = jax.block_until_ready(out)

    # Pure-JAX reference check
    flat_idx = labels[:, 0] * model.num_objs + labels[:, 1]
    ref = model.obj_baseline_weight[flat_idx]
    assert out.shape == (BATCH, model.num_rels)
    np.testing.assert_allclose(np.asarray(out), np.asarray(ref), rtol=1e-6, atol=1e-6)

    print("KERNEL_OK")
</pallas_src>

<mosaic_0001>
module attributes {stable_mosaic.version = 11 : i64} {
  func.func @_freq_bias_gather_kernel(%arg0: i32, %arg1: memref<8xi32, #tpu.memory_space<smem>>, %arg2: memref<64x128xf32, #tpu.memory_space<any>>, %arg3: memref<8x128xf32, #tpu.memory_space<vmem>>, %arg4: memref<8x!tpu.dma_semaphore, #tpu.memory_space<semaphore_mem>>) attributes {dimension_semantics = [#tpu.dimension_semantics<parallel>], iteration_bounds = array<i64: 1>, scalar_prefetch = 1 : i64, scratch_operands = 1 : i64, tpu.core_type = #tpu.core_type<tc>, window_params = [{}, {transform_indices = @transform_1, window_bounds = array<i64: 8, 128>}]} {
    %c8_i32 = arith.constant 8 : i32
    %0 = arith.muli %arg0, %c8_i32 : i32
    %c0_i32 = arith.constant 0 : i32
    %1 = arith.addi %0, %c0_i32 : i32
    %2 = arith.index_cast %1 : i32 to index
    %3 = memref.load %arg1[%2] : memref<8xi32, #tpu.memory_space<smem>>
    %c0_i32_0 = arith.constant 0 : i32
    %c0_i32_1 = arith.constant 0 : i32
    %4 = tpu.memref_slice %arg2[%3, %c0_i32_1] : memref<64x128xf32, #tpu.memory_space<any>> -> memref<1x128xf32, #tpu.memory_space<any>>
    %c0_i32_2 = arith.constant 0 : i32
    %c0_i32_3 = arith.constant 0 : i32
    %5 = tpu.memref_slice %arg3[%c0_i32_2, %c0_i32_3] : memref<8x128xf32, #tpu.memory_space<vmem>> -> memref<1x128xf32, #tpu.memory_space<vmem>>
    %6 = tpu.memref_slice %arg4[%c0_i32_0] : memref<8x!tpu.dma_semaphore, #tpu.memory_space<semaphore_mem>> -> memref<1x!tpu.dma_semaphore, #tpu.memory_space<semaphore_mem>>
    %7 = tpu.memref_squeeze %6 : memref<1x!tpu.dma_semaphore, #tpu.memory_space<semaphore_mem>> -> memref<!tpu.dma_semaphore, #tpu.memory_space<semaphore_mem>>
    tpu.enqueue_dma source(%4 : memref<1x128xf32, #tpu.memory_space<any>>) target(%5 : memref<1x128xf32, #tpu.memory_space<vmem>>) target_semaphore(%7 : memref<!tpu.dma_semaphore, #tpu.memory_space<semaphore_mem>>)
    %c1_i32 = arith.constant 1 : i32
    %8 = arith.addi %0, %c1_i32 : i32
    %9 = arith.index_cast %8 : i32 to index
    %10 = memref.load %arg1[%9] : memref<8xi32, #tpu.memory_space<smem>>
    %c1_i32_4 = arith.constant 1 : i32
    %c0_i32_5 = arith.constant 0 : i32
    %11 = tpu.memref_slice %arg2[%10, %c0_i32_5] : memref<64x128xf32, #tpu.memory_space<any>> -> memref<1x128xf32, #tpu.memory_space<any>>
    %c1_i32_6 = arith.constant 1 : i32
    %c0_i32_7 = arith.constant 0 : i32
    %12 = tpu.memref_slice %arg3[%c1_i32_6, %c0_i32_7] : memref<8x128xf32, #tpu.memory_space<vmem>> -> memref<1x128xf32, #tpu.memory_space<vmem>>
    %13 = tpu.memref_slice %arg4[%c1_i32_4] : memref<8x!tpu.dma_semaphore, #tpu.memory_space<semaphore_mem>> -> memref<1x!tpu.dma_semaphore, #tpu.memory_space<semaphore_mem>>
    %14 = tpu.memref_squeeze %13 : memref<1x!tpu.dma_semaphore, #tpu.memory_space<semaphore_mem>> -> memref<!tpu.dma_semaphore, #tpu.memory_space<semaphore_mem>>
    tpu.enqueue_dma source(%11 : memref<1x128xf32, #tpu.memory_space<any>>) target(%12 : memref<1x128xf32, #tpu.memory_space<vmem>>) target_semaphore(%14 : memref<!tpu.dma_semaphore, #tpu.memory_space<semaphore_mem>>)
    %c2_i32 = arith.constant 2 : i32
    %15 = arith.addi %0, %c2_i32 : i32
    %16 = arith.index_cast %15 : i32 to index
    %17 = memref.load %arg1[%16] : memref<8xi32, #tpu.memory_space<smem>>
    %c2_i32_8 = arith.constant 2 : i32
    %c0_i32_9 = arith.constant 0 : i32
    %18 = tpu.memref_slice %arg2[%17, %c0_i32_9] : memref<64x128xf32, #tpu.memory_space<any>> -> memref<1x128xf32, #tpu.memory_space<any>>
    %c2_i32_10 = arith.constant 2 : i32
    %c0_i32_11 = arith.constant 0 : i32
    %19 = tpu.memref_slice %arg3[%c2_i32_10, %c0_i32_11] : memref<8x128xf32, #tpu.memory_space<vmem>> -> memref<1x128xf32, #tpu.memory_space<vmem>>
    %20 = tpu.memref_slice %arg4[%c2_i32_8] : memref<8x!tpu.dma_semaphore, #tpu.memory_space<semaphore_mem>> -> memref<1x!tpu.dma_semaphore, #tpu.memory_space<semaphore_mem>>
    %21 = tpu.memref_squeeze %20 : memref<1x!tpu.dma_semaphore, #tpu.memory_space<semaphore_mem>> -> memref<!tpu.dma_semaphore, #tpu.memory_space<semaphore_mem>>
    tpu.enqueue_dma source(%18 : memref<1x128xf32, #tpu.memory_space<any>>) target(%19 : memref<1x128xf32, #tpu.memory_space<vmem>>) target_semaphore(%21 : memref<!tpu.dma_semaphore, #tpu.memory_space<semaphore_mem>>)
    %c3_i32 = arith.constant 3 : i32
    %22 = arith.addi %0, %c3_i32 : i32
    %23 = arith.index_cast %22 : i32 to index
    %24 = memref.load %arg1[%23] : memref<8xi32, #tpu.memory_space<smem>>
    %c3_i32_12 = arith.constant 3 : i32
    %c0_i32_13 = arith.constant 0 : i32
    %25 = tpu.memref_slice %arg2[%24, %c0_i32_13] : memref<64x128xf32, #tpu.memory_space<any>> -> memref<1x128xf32, #tpu.memory_space<any>>
    %c3_i32_14 = arith.constant 3 : i32
    %c0_i32_15 = arith.constant 0 : i32
    %26 = tpu.memref_slice %arg3[%c3_i32_14, %c0_i32_15] : memref<8x128xf32, #tpu.memory_space<vmem>> -> memref<1x128xf32, #tpu.memory_space<vmem>>
    %27 = tpu.memref_slice %arg4[%c3_i32_12] : memref<8x!tpu.dma_semaphore, #tpu.memory_space<semaphore_mem>> -> memref<1x!tpu.dma_semaphore, #tpu.memory_space<semaphore_mem>>
    %28 = tpu.memref_squeeze %27 : memref<1x!tpu.dma_semaphore, #tpu.memory_space<semaphore_mem>> -> memref<!tpu.dma_semaphore, #tpu.memory_space<semaphore_mem>>
    tpu.enqueue_dma source(%25 : memref<1x128xf32, #tpu.memory_space<any>>) target(%26 : memref<1x128xf32, #tpu.memory_space<vmem>>) target_semaphore(%28 : memref<!tpu.dma_semaphore, #tpu.memory_space<semaphore_mem>>)
    %c4_i32 = arith.constant 4 : i32
    %29 = arith.addi %0, %c4_i32 : i32
    %30 = arith.index_cast %29 : i32 to index
    %31 = memref.load %arg1[%30] : memref<8xi32, #tpu.memory_space<smem>>
    %c4_i32_16 = arith.constant 4 : i32
    %c0_i32_17 = arith.constant 0 : i32
    %32 = tpu.memref_slice %arg2[%31, %c0_i32_17] : memref<64x128xf32, #tpu.memory_space<any>> -> memref<1x128xf32, #tpu.memory_space<any>>
    %c4_i32_18 = arith.constant 4 : i32
    %c0_i32_19 = arith.constant 0 : i32
    %33 = tpu.memref_slice %arg3[%c4_i32_18, %c0_i32_19] : memref<8x128xf32, #tpu.memory_space<vmem>> -> memref<1x128xf32, #tpu.memory_space<vmem>>
    %34 = tpu.memref_slice %arg4[%c4_i32_16] : memref<8x!tpu.dma_semaphore, #tpu.memory_space<semaphore_mem>> -> memref<1x!tpu.dma_semaphore, #tpu.memory_space<semaphore_mem>>
    %35 = tpu.memref_squeeze %34 : memref<1x!tpu.dma_semaphore, #tpu.memory_space<semaphore_mem>> -> memref<!tpu.dma_semaphore, #tpu.memory_space<semaphore_mem>>
    tpu.enqueue_dma source(%32 : memref<1x128xf32, #tpu.memory_space<any>>) target(%33 : memref<1x128xf32, #tpu.memory_space<vmem>>) target_semaphore(%35 : memref<!tpu.dma_semaphore, #tpu.memory_space<semaphore_mem>>)
    %c5_i32 = arith.constant 5 : i32
    %36 = arith.addi %0, %c5_i32 : i32
    %37 = arith.index_cast %36 : i32 to index
    %38 = memref.load %arg1[%37] : memref<8xi32, #tpu.memory_space<smem>>
    %c5_i32_20 = arith.constant 5 : i32
    %c0_i32_21 = arith.constant 0 : i32
    %39 = tpu.memref_slice %arg2[%38, %c0_i32_21] : memref<64x128xf32, #tpu.memory_space<any>> -> memref<1x128xf32, #tpu.memory_space<any>>
    %c5_i32_22 = arith.constant 5 : i32
    %c0_i32_23 = arith.constant 0 : i32
    %40 = tpu.memref_slice %arg3[%c5_i32_22, %c0_i32_23] : memref<8x128xf32, #tpu.memory_space<vmem>> -> memref<1x128xf32, #tpu.memory_space<vmem>>
    %41 = tpu.memref_slice %arg4[%c5_i32_20] : memref<8x!tpu.dma_semaphore, #tpu.memory_space<semaphore_mem>> -> memref<1x!tpu.dma_semaphore, #tpu.memory_space<semaphore_mem>>
    %42 = tpu.memref_squeeze %41 : memref<1x!tpu.dma_semaphore, #tpu.memory_space<semaphore_mem>> -> memref<!tpu.dma_semaphore, #tpu.memory_space<semaphore_mem>>
    tpu.enqueue_dma source(%39 : memref<1x128xf32, #tpu.memory_space<any>>) target(%40 : memref<1x128xf32, #tpu.memory_space<vmem>>) target_semaphore(%42 : memref<!tpu.dma_semaphore, #tpu.memory_space<semaphore_mem>>)
    %c6_i32 = arith.constant 6 : i32
    %43 = arith.addi %0, %c6_i32 : i32
    %44 = arith.index_cast %43 : i32 to index
    %45 = memref.load %arg1[%44] : memref<8xi32, #tpu.memory_space<smem>>
    %c6_i32_24 = arith.constant 6 : i32
    %c0_i32_25 = arith.constant 0 : i32
    %46 = tpu.memref_slice %arg2[%45, %c0_i32_25] : memref<64x128xf32, #tpu.memory_space<any>> -> memref<1x128xf32, #tpu.memory_space<any>>
    %c6_i32_26 = arith.constant 6 : i32
    %c0_i32_27 = arith.constant 0 : i32
    %47 = tpu.memref_slice %arg3[%c6_i32_26, %c0_i32_27] : memref<8x128xf32, #tpu.memory_space<vmem>> -> memref<1x128xf32, #tpu.memory_space<vmem>>
    %48 = tpu.memref_slice %arg4[%c6_i32_24] : memref<8x!tpu.dma_semaphore, #tpu.memory_space<semaphore_mem>> -> memref<1x!tpu.dma_semaphore, #tpu.memory_space<semaphore_mem>>
    %49 = tpu.memref_squeeze %48 : memref<1x!tpu.dma_semaphore, #tpu.memory_space<semaphore_mem>> -> memref<!tpu.dma_semaphore, #tpu.memory_space<semaphore_mem>>
    tpu.enqueue_dma source(%46 : memref<1x128xf32, #tpu.memory_space<any>>) target(%47 : memref<1x128xf32, #tpu.memory_space<vmem>>) target_semaphore(%49 : memref<!tpu.dma_semaphore, #tpu.memory_space<semaphore_mem>>)
    %c7_i32 = arith.constant 7 : i32
    %50 = arith.addi %0, %c7_i32 : i32
    %51 = arith.index_cast %50 : i32 to index
    %52 = memref.load %arg1[%51] : memref<8xi32, #tpu.memory_space<smem>>
    %c7_i32_28 = arith.constant 7 : i32
    %c0_i32_29 = arith.constant 0 : i32
    %53 = tpu.memref_slice %arg2[%52, %c0_i32_29] : memref<64x128xf32, #tpu.memory_space<any>> -> memref<1x128xf32, #tpu.memory_space<any>>
    %c7_i32_30 = arith.constant 7 : i32
    %c0_i32_31 = arith.constant 0 : i32
    %54 = tpu.memref_slice %arg3[%c7_i32_30, %c0_i32_31] : memref<8x128xf32, #tpu.memory_space<vmem>> -> memref<1x128xf32, #tpu.memory_space<vmem>>
    %55 = tpu.memref_slice %arg4[%c7_i32_28] : memref<8x!tpu.dma_semaphore, #tpu.memory_space<semaphore_mem>> -> memref<1x!tpu.dma_semaphore, #tpu.memory_space<semaphore_mem>>
    %56 = tpu.memref_squeeze %55 : memref<1x!tpu.dma_semaphore, #tpu.memory_space<semaphore_mem>> -> memref<!tpu.dma_semaphore, #tpu.memory_space<semaphore_mem>>
    tpu.enqueue_dma source(%53 : memref<1x128xf32, #tpu.memory_space<any>>) target(%54 : memref<1x128xf32, #tpu.memory_space<vmem>>) target_semaphore(%56 : memref<!tpu.dma_semaphore, #tpu.memory_space<semaphore_mem>>)
    %c0_i32_32 = arith.constant 0 : i32
    %57 = arith.addi %0, %c0_i32_32 : i32
    %58 = arith.index_cast %57 : i32 to index
    %59 = memref.load %arg1[%58] : memref<8xi32, #tpu.memory_space<smem>>
    %c0_i32_33 = arith.constant 0 : i32
    %c0_i32_34 = arith.constant 0 : i32
    %60 = tpu.memref_slice %arg2[%59, %c0_i32_34] : memref<64x128xf32, #tpu.memory_space<any>> -> memref<1x128xf32, #tpu.memory_space<any>>
    %c0_i32_35 = arith.constant 0 : i32
    %c0_i32_36 = arith.constant 0 : i32
    %61 = tpu.memref_slice %arg3[%c0_i32_35, %c0_i32_36] : memref<8x128xf32, #tpu.memory_space<vmem>> -> memref<1x128xf32, #tpu.memory_space<vmem>>
    %62 = tpu.memref_slice %arg4[%c0_i32_33] : memref<8x!tpu.dma_semaphore, #tpu.memory_space<semaphore_mem>> -> memref<1x!tpu.dma_semaphore, #tpu.memory_space<semaphore_mem>>
    %63 = tpu.memref_squeeze %62 : memref<1x!tpu.dma_semaphore, #tpu.memory_space<semaphore_mem>> -> memref<!tpu.dma_semaphore, #tpu.memory_space<semaphore_mem>>
    tpu.wait_dma2 semaphore(%63 : memref<!tpu.dma_semaphore, #tpu.memory_space<semaphore_mem>>) src(%60 : memref<1x128xf32, #tpu.memory_space<any>>) dst(%61 : memref<1x128xf32, #tpu.memory_space<vmem>>)
    %c1_i32_37 = arith.constant 1 : i32
    %64 = arith.addi %0, %c1_i32_37 : i32
    %65 = arith.index_cast %64 : i32 to index
    %66 = memref.load %arg1[%65] : memref<8xi32, #tpu.memory_space<smem>>
    %c1_i32_38 = arith.constant 1 : i32
    %c0_i32_39 = arith.constant 0 : i32
    %67 = tpu.memref_slice %arg2[%66, %c0_i32_39] : memref<64x128xf32, #tpu.memory_space<any>> -> memref<1x128xf32, #tpu.memory_space<any>>
    %c1_i32_40 = arith.constant 1 : i32
    %c0_i32_41 = arith.constant 0 : i32
    %68 = tpu.memref_slice %arg3[%c1_i32_40, %c0_i32_41] : memref<8x128xf32, #tpu.memory_space<vmem>> -> memref<1x128xf32, #tpu.memory_space<vmem>>
    %69 = tpu.memref_slice %arg4[%c1_i32_38] : memref<8x!tpu.dma_semaphore, #tpu.memory_space<semaphore_mem>> -> memref<1x!tpu.dma_semaphore, #tpu.memory_space<semaphore_mem>>
    %70 = tpu.memref_squeeze %69 : memref<1x!tpu.dma_semaphore, #tpu.memory_space<semaphore_mem>> -> memref<!tpu.dma_semaphore, #tpu.memory_space<semaphore_mem>>
    tpu.wait_dma2 semaphore(%70 : memref<!tpu.dma_semaphore, #tpu.memory_space<semaphore_mem>>) src(%67 : memref<1x128xf32, #tpu.memory_space<any>>) dst(%68 : memref<1x128xf32, #tpu.memory_space<vmem>>)
    %c2_i32_42 = arith.constant 2 : i32
    %71 = arith.addi %0, %c2_i32_42 : i32
    %72 = arith.index_cast %71 : i32 to index
    %73 = memref.load %arg1[%72] : memref<8xi32, #tpu.memory_space<smem>>
    %c2_i32_43 = arith.constant 2 : i32
    %c0_i32_44 = arith.constant 0 : i32
    %74 = tpu.memref_slice %arg2[%73, %c0_i32_44] : memref<64x128xf32, #tpu.memory_space<any>> -> memref<1x128xf32, #tpu.memory_space<any>>
    %c2_i32_45 = arith.constant 2 : i32
    %c0_i32_46 = arith.constant 0 : i32
    %75 = tpu.memref_slice %arg3[%c2_i32_45, %c0_i32_46] : memref<8x128xf32, #tpu.memory_space<vmem>> -> memref<1x128xf32, #tpu.memory_space<vmem>>
    %76 = tpu.memref_slice %arg4[%c2_i32_43] : memref<8x!tpu.dma_semaphore, #tpu.memory_space<semaphore_mem>> -> memref<1x!tpu.dma_semaphore, #tpu.memory_space<semaphore_mem>>
    %77 = tpu.memref_squeeze %76 : memref<1x!tpu.dma_semaphore, #tpu.memory_space<semaphore_mem>> -> memref<!tpu.dma_semaphore, #tpu.memory_space<semaphore_mem>>
    tpu.wait_dma2 semaphore(%77 : memref<!tpu.dma_semaphore, #tpu.memory_space<semaphore_mem>>) src(%74 : memref<1x128xf32, #tpu.memory_space<any>>) dst(%75 : memref<1x128xf32, #tpu.memory_space<vmem>>)
    %c3_i32_47 = arith.constant 3 : i32
    %78 = arith.addi %0, %c3_i32_47 : i32
    %79 = arith.index_cast %78 : i32 to index
    %80 = memref.load %arg1[%79] : memref<8xi32, #tpu.memory_space<smem>>
    %c3_i32_48 = arith.constant 3 : i32
    %c0_i32_49 = arith.constant 0 : i32
    %81 = tpu.memref_slice %arg2[%80, %c0_i32_49] : memref<64x128xf32, #tpu.memory_space<any>> -> memref<1x128xf32, #tpu.memory_space<any>>
    %c3_i32_50 = arith.constant 3 : i32
    %c0_i32_51 = arith.constant 0 : i32
    %82 = tpu.memref_slice %arg3[%c3_i32_50, %c0_i32_51] : memref<8x128xf32, #tpu.memory_space<vmem>> -> memref<1x128xf32, #tpu.memory_space<vmem>>
    %83 = tpu.memref_slice %arg4[%c3_i32_48] : memref<8x!tpu.dma_semaphore, #tpu.memory_space<semaphore_mem>> -> memref<1x!tpu.dma_semaphore, #tpu.memory_space<semaphore_mem>>
    %84 = tpu.memref_squeeze %83 : memref<1x!tpu.dma_semaphore, #tpu.memory_space<semaphore_mem>> -> memref<!tpu.dma_semaphore, #tpu.memory_space<semaphore_mem>>
    tpu.wait_dma2 semaphore(%84 : memref<!tpu.dma_semaphore, #tpu.memory_space<semaphore_mem>>) src(%81 : memref<1x128xf32, #tpu.memory_space<any>>) dst(%82 : memref<1x128xf32, #tpu.memory_space<vmem>>)
    %c4_i32_52 = arith.constant 4 : i32
    %85 = arith.addi %0, %c4_i32_52 : i32
    %86 = arith.index_cast %85 : i32 to index
    %87 = memref.load %arg1[%86] : memref<8xi32, #tpu.memory_space<smem>>
    %c4_i32_53 = arith.constant 4 : i32
    %c0_i32_54 = arith.constant 0 : i32
    %88 = tpu.memref_slice %arg2[%87, %c0_i32_54] : memref<64x128xf32, #tpu.memory_space<any>> -> memref<1x128xf32, #tpu.memory_space<any>>
    %c4_i32_55 = arith.constant 4 : i32
    %c0_i32_56 = arith.constant 0 : i32
    %89 = tpu.memref_slice %arg3[%c4_i32_55, %c0_i32_56] : memref<8x128xf32, #tpu.memory_space<vmem>> -> memref<1x128xf32, #tpu.memory_space<vmem>>
    %90 = tpu.memref_slice %arg4[%c4_i32_53] : memref<8x!tpu.dma_semaphore, #tpu.memory_space<semaphore_mem>> -> memref<1x!tpu.dma_semaphore, #tpu.memory_space<semaphore_mem>>
    %91 = tpu.memref_squeeze %90 : memref<1x!tpu.dma_semaphore, #tpu.memory_space<semaphore_mem>> -> memref<!tpu.dma_semaphore, #tpu.memory_space<semaphore_mem>>
    tpu.wait_dma2 semaphore(%91 : memref<!tpu.dma_semaphore, #tpu.memory_space<semaphore_mem>>) src(%88 : memref<1x128xf32, #tpu.memory_space<any>>) dst(%89 : memref<1x128xf32, #tpu.memory_space<vmem>>)
    %c5_i32_57 = arith.constant 5 : i32
    %92 = arith.addi %0, %c5_i32_57 : i32
    %93 = arith.index_cast %92 : i32 to index
    %94 = memref.load %arg1[%93] : memref<8xi32, #tpu.memory_space<smem>>
    %c5_i32_58 = arith.constant 5 : i32
    %c0_i32_59 = arith.constant 0 : i32
    %95 = tpu.memref_slice %arg2[%94, %c0_i32_59] : memref<64x128xf32, #tpu.memory_space<any>> -> memref<1x128xf32, #tpu.memory_space<any>>
    %c5_i32_60 = arith.constant 5 : i32
    %c0_i32_61 = arith.constant 0 : i32
    %96 = tpu.memref_slice %arg3[%c5_i32_60, %c0_i32_61] : memref<8x128xf32, #tpu.memory_space<vmem>> -> memref<1x128xf32, #tpu.memory_space<vmem>>
    %97 = tpu.memref_slice %arg4[%c5_i32_58] : memref<8x!tpu.dma_semaphore, #tpu.memory_space<semaphore_mem>> -> memref<1x!tpu.dma_semaphore, #tpu.memory_space<semaphore_mem>>
    %98 = tpu.memref_squeeze %97 : memref<1x!tpu.dma_semaphore, #tpu.memory_space<semaphore_mem>> -> memref<!tpu.dma_semaphore, #tpu.memory_space<semaphore_mem>>
    tpu.wait_dma2 semaphore(%98 : memref<!tpu.dma_semaphore, #tpu.memory_space<semaphore_mem>>) src(%95 : memref<1x128xf32, #tpu.memory_space<any>>) dst(%96 : memref<1x128xf32, #tpu.memory_space<vmem>>)
    %c6_i32_62 = arith.constant 6 : i32
    %99 = arith.addi %0, %c6_i32_62 : i32
    %100 = arith.index_cast %99 : i32 to index
    %101 = memref.load %arg1[%100] : memref<8xi32, #tpu.memory_space<smem>>
    %c6_i32_63 = arith.constant 6 : i32
    %c0_i32_64 = arith.constant 0 : i32
    %102 = tpu.memref_slice %arg2[%101, %c0_i32_64] : memref<64x128xf32, #tpu.memory_space<any>> -> memref<1x128xf32, #tpu.memory_space<any>>
    %c6_i32_65 = arith.constant 6 : i32
    %c0_i32_66 = arith.constant 0 : i32
    %103 = tpu.memref_slice %arg3[%c6_i32_65, %c0_i32_66] : memref<8x128xf32, #tpu.memory_space<vmem>> -> memref<1x128xf32, #tpu.memory_space<vmem>>
    %104 = tpu.memref_slice %arg4[%c6_i32_63] : memref<8x!tpu.dma_semaphore, #tpu.memory_space<semaphore_mem>> -> memref<1x!tpu.dma_semaphore, #tpu.memory_space<semaphore_mem>>
    %105 = tpu.memref_squeeze %104 : memref<1x!tpu.dma_semaphore, #tpu.memory_space<semaphore_mem>> -> memref<!tpu.dma_semaphore, #tpu.memory_space<semaphore_mem>>
    tpu.wait_dma2 semaphore(%105 : memref<!tpu.dma_semaphore, #tpu.memory_space<semaphore_mem>>) src(%102 : memref<1x128xf32, #tpu.memory_space<any>>) dst(%103 : memref<1x128xf32, #tpu.memory_space<vmem>>)
    %c7_i32_67 = arith.constant 7 : i32
    %106 = arith.addi %0, %c7_i32_67 : i32
    %107 = arith.index_cast %106 : i32 to index
    %108 = memref.load %arg1[%107] : memref<8xi32, #tpu.memory_space<smem>>
    %c7_i32_68 = arith.constant 7 : i32
    %c0_i32_69 = arith.constant 0 : i32
    %109 = tpu.memref_slice %arg2[%108, %c0_i32_69] : memref<64x128xf32, #tpu.memory_space<any>> -> memref<1x128xf32, #tpu.memory_space<any>>
    %c7_i32_70 = arith.constant 7 : i32
    %c0_i32_71 = arith.constant 0 : i32
    %110 = tpu.memref_slice %arg3[%c7_i32_70, %c0_i32_71] : memref<8x128xf32, #tpu.memory_space<vmem>> -> memref<1x128xf32, #tpu.memory_space<vmem>>
    %111 = tpu.memref_slice %arg4[%c7_i32_68] : memref<8x!tpu.dma_semaphore, #tpu.memory_space<semaphore_mem>> -> memref<1x!tpu.dma_semaphore, #tpu.memory_space<semaphore_mem>>
    %112 = tpu.memref_squeeze %111 : memref<1x!tpu.dma_semaphore, #tpu.memory_space<semaphore_mem>> -> memref<!tpu.dma_semaphore, #tpu.memory_space<semaphore_mem>>
    tpu.wait_dma2 semaphore(%112 : memref<!tpu.dma_semaphore, #tpu.memory_space<semaphore_mem>>) src(%109 : memref<1x128xf32, #tpu.memory_space<any>>) dst(%110 : memref<1x128xf32, #tpu.memory_space<vmem>>)
    return
  }
  func.func @transform_1(%arg0: i32, %arg1: memref<8xi32, #tpu.memory_space<smem>>) -> (i32, i32) {
    %c0_i32 = arith.constant 0 : i32
    %c0_i32_0 = arith.constant 0 : i32
    return %arg0, %c0_i32 : i32, i32
  }
}

</mosaic_0001>

<bundles_post_ra>
// kernel: tpu_custom_call.1
= control target key start
LH: loop header
LB: loop body
LE: loop exit
PB: predicated region body
PF: predicated region fallthrough
CT: control target
= control target key end

     0   :  { %s534_s12 = smov [#allocation4]   ;;  %s656_s0 = inlined_call_operand.hbm [shape: s32[8], index: 0, kind: input, shape index: {}]   ;;  %s657_s1 = inlined_call_operand.hbm [shape: f32[64,128], index: 1, kind: input, shape index: {}]   ;;  %s658_s2 = inlined_call_operand.hbm [shape: f32[8,128], index: 2, kind: output, shape index: {}]  }
   0x1   :  { %s8_s11 = sshll.u32 %s656_s0, 4  ;;  %s9_s11 = int_to_ptr.hbm [resolvable:$true] %s8_s11 }
   0x2   :  { %11 = dma.hbm_to_smem %s9_s11, 16, %s534_s12, [#allocation3] }
   0x3   :  { %514 = dma.done.wait [#allocation3], 16 }
   0x4   :  { %515 = vsyncadd [#allocation3], 4294967280 }
   0x5   :  { %14 = sfence }
   0x6   :  { %15 = vsyncpa [#allocation6], 0  ;;  %s17_s13 = sld [smem:[#allocation4]]  ;;  %s535_s14 = smov [#allocation5]  }
   0x7   :  { %s561_s15 = sshll.u32 %s535_s14, 4  ;;  %s262_s16 = sld [smem:[#allocation4 + $0x1]]  ;;  %s29_s15 = int_to_ptr.vmem [resolvable:$true] %s561_s15 }
   0x8   :  { %s536_s17 = smov [#allocation5 + $0x1]   ;;  %s566_s19 = sld [smem:[#allocation4 + $0x2]] }
   0x9   :  { %s564_s18 = sshll.u32 %s536_s17, 4  ;;  %s537_s0 = smov [#allocation5 + $0x2]   ;;  %s47_s18 = int_to_ptr.vmem [resolvable:$true] %s564_s18 }
   0xa   :  { %s569_s20 = sshll.u32 %s537_s0, 4  ;;  %s571_s21 = sld [smem:[#allocation4 + $0x3]]  ;;  %s65_s20 = int_to_ptr.vmem [resolvable:$true] %s569_s20 }
   0xb   :  { %s583_s6 = scalar_lea.hbm %s657_s1, 64 }
   0xc   :  { %s18_s24 = scalar_lea.hbm %s657_s1, %s17_s13 }
   0xd   :  { %s26_s25 = sshll.u32 %s18_s24, 4  ;;  %s34_s28 = scalar_lea.hbm %s657_s1, %s262_s16  ;;  %s27_s25 = int_to_ptr.hbm [resolvable:$true] %s26_s25 }
   0xe   :  { %s44_s29 = sshll.u32 %s34_s28, 4  ;;  %s298_s30 = sshra.s32 %s27_s25, 4  ;;  %s299_s30 = int_to_ptr.hbm [resolvable:$true] %s298_s30  ;;  %s45_s29 = int_to_ptr.hbm [resolvable:$true] %s44_s29 }
   0xf   :  { %s300_s3 = scalar_lea.hbm %s299_s30, 1  ;;  %p303_p1 = scmp.lt.s32.totalorder %s299_s30, %s657_s1 }
  0x10   :  { %p301_p0 = scmp.ne.s32.totalorder %s299_s30, %s300_s3  ;;  %p304_p2 = scmp.lt.s32.totalorder %s583_s6, %s300_s3 }
  0x12   :  { %p305_p3 = por %p304_p2, %p303_p1 }
  0x14   :  { %p306_p4 = pnand %p305_p3, %p301_p0 }
  0x16   :  { %309 = shalt.err (!%p306_p4)  }
  0x17   :  { %31 = dma.hbm_to_vmem [thread:$0]  %s27_s25, 16, %s29_s15, [#allocation2] }
  0x18   :  { %s52_s11 = scalar_lea.hbm %s657_s1, %s566_s19  ;;  %s322_s12 = sshra.s32 %s45_s29, 4  ;;  %s323_s12 = int_to_ptr.hbm [resolvable:$true] %s322_s12 }
  0x19   :  { %s324_s13 = scalar_lea.hbm %s323_s12, 1  ;;  %p327_p6 = scmp.lt.s32.totalorder %s323_s12, %s657_s1 }
  0x1a   :  { %p325_p5 = scmp.ne.s32.totalorder %s323_s12, %s324_s13  ;;  %p328_p7 = scmp.lt.s32.totalorder %s583_s6, %s324_s13 }
  0x1c   :  { %p329_p8 = por %p328_p7, %p327_p6 }
  0x1e   :  { %p330_p9 = pnand %p329_p8, %p325_p5 }
  0x20   :  { %333 = shalt.err (!%p330_p9)  }
  0x21   :  { %49 = dma.hbm_to_vmem [thread:$0]  %s45_s29, 16, %s47_s18, [#allocation2 + $0x1] }
  0x22   :  { %s62_s17 = sshll.u32 %s52_s11, 4  ;;  %s70_s22 = scalar_lea.hbm %s657_s1, %s571_s21  ;;  %s63_s17 = int_to_ptr.hbm [resolvable:$true] %s62_s17 }
  0x23   :  { %s80_s23 = sshll.u32 %s70_s22, 4  ;;  %s346_s24 = sshra.s32 %s63_s17, 4  ;;  %s347_s24 = int_to_ptr.hbm [resolvable:$true] %s346_s24  ;;  %s81_s23 = int_to_ptr.hbm [resolvable:$true] %s80_s23 }
  0x24   :  { %s348_s25 = scalar_lea.hbm %s347_s24, 1  ;;  %p351_p11 = scmp.lt.s32.totalorder %s347_s24, %s657_s1 }
  0x25   :  { %p349_p10 = scmp.ne.s32.totalorder %s347_s24, %s348_s25  ;;  %p352_p12 = scmp.lt.s32.totalorder %s583_s6, %s348_s25 }
  0x27   :  { %p353_p13 = por %p352_p12, %p351_p11 }
  0x29   :  { %p354_p0 = pnand %p353_p13, %p349_p10 }
  0x2b   :  { %357 = shalt.err (!%p354_p0)  }
  0x2c   :  { %67 = dma.hbm_to_vmem [thread:$0]  %s63_s17, 16, %s65_s20, [#allocation2 + $0x2] }
  0x2d   :  { %s538_s18 = smov [#allocation5 + $0x3]   ;;  %s265_s28 = sld [smem:[#allocation4 + $0x4]] }
  0x2e   :  { %s82_s21 = sshll.u32 %s538_s18, 4  ;;  %s370_s29 = sshra.s32 %s81_s23, 4  ;;  %s83_s21 = int_to_ptr.vmem [resolvable:$true] %s82_s21  ;;  %s371_s29 = int_to_ptr.hbm [resolvable:$true] %s370_s29 }
  0x2f   :  { %s372_s30 = scalar_lea.hbm %s371_s29, 1  ;;  %p375_p2 = scmp.lt.s32.totalorder %s371_s29, %s657_s1 }
  0x30   :  { %p373_p1 = scmp.ne.s32.totalorder %s371_s29, %s372_s30  ;;  %p376_p3 = scmp.lt.s32.totalorder %s583_s6, %s372_s30 }
  0x32   :  { %p377_p4 = por %p376_p3, %p375_p2 }
  0x34   :  { %p378_p5 = pnand %p377_p4, %p373_p1 }
  0x36   :  { %381 = shalt.err (!%p378_p5)  }
  0x37   :  { %85 = dma.hbm_to_vmem [thread:$0]  %s81_s23, 16, %s83_s21, [#allocation2 + $0x3] }
  0x38   :  { %s539_s5 = smov [#allocation5 + $0x4]   ;;  %s266_s7 = sld [smem:[#allocation4 + $0x5]] }
  0x39   :  { %s100_s20 = sshll.u32 %s539_s5, 4  ;;  %s540_s8 = smov [#allocation5 + $0x5]   ;;  %s101_s20 = int_to_ptr.vmem [resolvable:$true] %s100_s20 }
  0x3a   :  { %s615_s9 = sshll.u32 %s540_s8, 4  ;;  %s267_s10 = sld [smem:[#allocation4 + $0x6]]  ;;  %s119_s9 = int_to_ptr.vmem [resolvable:$true] %s615_s9 }
  0x3b   :  { %s88_s13 = scalar_lea.hbm %s657_s1, %s265_s28  ;;  %s541_s16 = smov [#allocation5 + $0x6]  }
  0x3c   :  { %s98_s14 = sshll.u32 %s88_s13, 4  ;;  %s621_s17 = sshll.u32 %s541_s16, 4  ;;  %s99_s14 = int_to_ptr.hbm [resolvable:$true] %s98_s14  ;;  %s137_s17 = int_to_ptr.vmem [resolvable:$true] %s621_s17 }
  0x3d   :  { %s394_s0 = sshra.s32 %s99_s14, 4  ;;  %s395_s0 = int_to_ptr.hbm [resolvable:$true] %s394_s0 }
  0x3e   :  { %s396_s19 = scalar_lea.hbm %s395_s0, 1  ;;  %p399_p7 = scmp.lt.s32.totalorder %s395_s0, %s657_s1 }
  0x3f   :  { %p397_p6 = scmp.ne.s32.totalorder %s395_s0, %s396_s19  ;;  %p400_p8 = scmp.lt.s32.totalorder %s583_s6, %s396_s19 }
  0x41   :  { %p401_p9 = por %p400_p8, %p399_p7 }
  0x43   :  { %p402_p10 = pnand %p401_p9, %p397_p6 }
  0x45   :  { %405 = shalt.err (!%p402_p10)  }
  0x46   :  { %103 = dma.hbm_to_vmem [thread:$0]  %s99_s14, 16, %s101_s20, [#allocation2 + $0x4] }
  0x47   :  { %s106_s26 = scalar_lea.hbm %s657_s1, %s266_s7  ;;  %s124_s28 = scalar_lea.hbm %s657_s1, %s267_s10 }
  0x48   :  { %s116_s27 = sshll.u32 %s106_s26, 4  ;;  %s134_s29 = sshll.u32 %s124_s28, 4  ;;  %s117_s27 = int_to_ptr.hbm [resolvable:$true] %s116_s27  ;;  %s135_s29 = int_to_ptr.hbm [resolvable:$true] %s134_s29 }
  0x49   :  { %s418_s30 = sshra.s32 %s117_s27, 4  ;;  %s419_s30 = int_to_ptr.hbm [resolvable:$true] %s418_s30 }
  0x4a   :  { %s420_s3 = scalar_lea.hbm %s419_s30, 1  ;;  %p423_p12 = scmp.lt.s32.totalorder %s419_s30, %s657_s1 }
  0x4b   :  { %p421_p11 = scmp.ne.s32.totalorder %s419_s30, %s420_s3  ;;  %p424_p13 = scmp.lt.s32.totalorder %s583_s6, %s420_s3 }
  0x4d   :  { %p425_p0 = por %p424_p13, %p423_p12 }
  0x4f   :  { %p426_p1 = pnand %p425_p0, %p421_p11 }
  0x51   :  { %429 = shalt.err (!%p426_p1)  }
  0x52   :  { %121 = dma.hbm_to_vmem [thread:$0]  %s117_s27, 16, %s119_s9, [#allocation2 + $0x5] }
  0x53   :  { %s268_s20 = sld [smem:[#allocation4 + $0x7]]  ;;  %s442_s7 = sshra.s32 %s135_s29, 4  ;;  %s443_s7 = int_to_ptr.hbm [resolvable:$true] %s442_s7 }
  0x54   :  { %s444_s8 = scalar_lea.hbm %s443_s7, 1  ;;  %p447_p3 = scmp.lt.s32.totalorder %s443_s7, %s657_s1 }
  0x55   :  { %p445_p2 = scmp.ne.s32.totalorder %s443_s7, %s444_s8  ;;  %p448_p4 = scmp.lt.s32.totalorder %s583_s6, %s444_s8 }
  0x57   :  { %p449_p5 = por %p448_p4, %p447_p3 }
  0x59   :  { %p450_p6 = pnand %p449_p5, %p445_p2 }
  0x5b   :  { %453 = shalt.err (!%p450_p6)  }
  0x5c   :  { %139 = dma.hbm_to_vmem [thread:$0]  %s135_s29, 16, %s137_s17, [#allocation2 + $0x6] }
  0x5d   :  { %s542_s12 = smov [#allocation5 + $0x7]   ;;  %s142_s16 = scalar_lea.hbm %s657_s1, %s268_s20 }
  0x5e   :  { %s154_s13 = sshll.u32 %s542_s12, 4  ;;  %s152_s0 = sshll.u32 %s142_s16, 4  ;;  %s155_s13 = int_to_ptr.vmem [resolvable:$true] %s154_s13  ;;  %s153_s0 = int_to_ptr.hbm [resolvable:$true] %s152_s0 }
  0x5f   :  { %s466_s19 = sshra.s32 %s153_s0, 4  ;;  %s467_s19 = int_to_ptr.hbm [resolvable:$true] %s466_s19 }
  0x60   :  { %s468_s22 = scalar_lea.hbm %s467_s19, 1  ;;  %p471_p8 = scmp.lt.s32.totalorder %s467_s19, %s657_s1 }
  0x61   :  { %p469_p7 = scmp.ne.s32.totalorder %s467_s19, %s468_s22  ;;  %p472_p9 = scmp.lt.s32.totalorder %s583_s6, %s468_s22 }
  0x63   :  { %p473_p10 = por %p472_p9, %p471_p8 }
  0x65   :  { %p474_p11 = pnand %p473_p10, %p469_p7 }
  0x67   :  { %477 = shalt.err (!%p474_p11)  }
  0x68   :  { %157 = dma.hbm_to_vmem [thread:$0]  %s153_s0, 16, %s155_s13, [#allocation2 + $0x7] }
  0x69   :  { %516 = dma.done.wait [#allocation2], 16 }
  0x6a   :  { %517 = vsyncadd [#allocation2], 4294967280 }
  0x6b   :  { %518 = dma.done.wait [#allocation2 + $0x1], 16 }
  0x6c   :  { %519 = vsyncadd [#allocation2 + $0x1], 4294967280 }
  0x6d   :  { %520 = dma.done.wait [#allocation2 + $0x2], 16 }
  0x6e   :  { %521 = vsyncadd [#allocation2 + $0x2], 4294967280 }
  0x6f   :  { %522 = dma.done.wait [#allocation2 + $0x3], 16 }
  0x70   :  { %523 = vsyncadd [#allocation2 + $0x3], 4294967280 }
  0x71   :  { %524 = dma.done.wait [#allocation2 + $0x4], 16 }
  0x72   :  { %525 = vsyncadd [#allocation2 + $0x4], 4294967280 }
  0x73   :  { %526 = dma.done.wait [#allocation2 + $0x5], 16 }
  0x74   :  { %527 = vsyncadd [#allocation2 + $0x5], 4294967280 }
  0x75   :  { %528 = dma.done.wait [#allocation2 + $0x6], 16 }
  0x76   :  { %529 = vsyncadd [#allocation2 + $0x6], 4294967280 }
  0x77   :  { %530 = dma.done.wait [#allocation2 + $0x7], 16 }
  0x78   :  { %531 = vsyncadd [#allocation2 + $0x7], 4294967280  ;;  %s190_s17 = sshll.u32 %s658_s2, 4  ;;  %s191_s17 = int_to_ptr.hbm [resolvable:$true] %s190_s17 }
  0x79   :  { %193 = dma.vmem_to_hbm [thread:$0]  %s29_s15, 128, %s191_s17, [#allocation6]  }
  0x7a   :  { %532 = dma.done.wait [#allocation6], 128  }
  0x7b   :  { %533 = vsyncadd [#allocation6], 4294967168 }
  0x7c   :  { %198 = vsyncpa [#allocation6], 1 }
  0x7d   :  { %199 = vsyncmov [#allocation2] }
  0x80   :  { %s200_s25 = vpop.sfrf %199 }
  0x81   :  { %p269_p12 = scmp.ne.s32.totalorder %s200_s25, 0 }
  0x83   :  { %204 = shalt.err (%p269_p12)  }
  0x84   :  { %206 = vsyncmov [#allocation2 + $0x1] }
  0x87   :  { %s207_s26 = vpop.sfrf %206 }
  0x88   :  { %p270_p13 = scmp.ne.s32.totalorder %s207_s26, 0 }
  0x8a   :  { %211 = shalt.err (%p270_p13)  }
  0x8b   :  { %213 = vsyncmov [#allocation2 + $0x2] }
  0x8e   :  { %s214_s27 = vpop.sfrf %213 }
  0x8f   :  { %p271_p0 = scmp.ne.s32.totalorder %s214_s27, 0 }
  0x91   :  { %218 = shalt.err (%p271_p0)  }
  0x92   :  { %220 = vsyncmov [#allocation2 + $0x3] }
  0x95   :  { %s221_s2 = vpop.sfrf %220 }
  0x96   :  { %p272_p1 = scmp.ne.s32.totalorder %s221_s2, 0 }
  0x98   :  { %225 = shalt.err (%p272_p1)  }
  0x99   :  { %227 = vsyncmov [#allocation2 + $0x4] }
  0x9c   :  { %s228_s15 = vpop.sfrf %227 }
  0x9d   :  { %p273_p2 = scmp.ne.s32.totalorder %s228_s15, 0 }
  0x9f   :  { %232 = shalt.err (%p273_p2)  }
  0xa0   :  { %234 = vsyncmov [#allocation2 + $0x5] }
  0xa3   :  { %s235_s18 = vpop.sfrf %234 }
  0xa4   :  { %p274_p3 = scmp.ne.s32.totalorder %s235_s18, 0 }
  0xa6   :  { %239 = shalt.err (%p274_p3)  }
  0xa7   :  { %241 = vsyncmov [#allocation2 + $0x6] }
  0xaa   :  { %s242_s21 = vpop.sfrf %241 }
  0xab   :  { %p275_p4 = scmp.ne.s32.totalorder %s242_s21, 0 }
  0xad   :  { %246 = shalt.err (%p275_p4)  }
  0xae   :  { %248 = vsyncmov [#allocation2 + $0x7] }
  0xb1   :  { %s249_s28 = vpop.sfrf %248 }
  0xb2   :  { %p276_p5 = scmp.ne.s32.totalorder %s249_s28, 0 }
  0xb4   :  { %253 = shalt.err (%p276_p5)  }

</bundles_post_ra>
